<compile_context>
chip_gen: v7x
topology: tpu7x:2x2x1
jax: 0.10.0
libtpu: 0.0.40
codegen_flags: <defaults>
</compile_context>

<pallas_src>
import functools

import jax
import jax.numpy as jnp
from jax.experimental import pallas as pl
from jax.experimental.pallas import tpu as pltpu


def _coord_att_kernel(*refs, bn, C, H, W, gw_by_tile):
    if gw_by_tile:
        (x_ref, pmat_ref, inv_ref, w1_ref, b1_ref,
         wh_ref, bh_ref, ww_ref, bw_ref, eh_ref, o_ref) = refs
        ew_ref = None
    else:
        (x_ref, pmat_ref, inv_ref, w1_ref, b1_ref,
         wh_ref, bh_ref, ww_ref, bw_ref, eh_ref, ew_ref, o_ref) = refs

    f32 = jnp.float32
    mm = pmat_ref.dtype                 # matmul / gate dtype (bf16 fast path or f32)
    rows = bn * C

    x = x_ref[...]                      # (bn*C, HW), native dtype, lane-dense

    # Both adaptive average pools as ONE lane-dense MXU matmul over all bn*C rows.
    # pmat columns [:H] sum over W (-> x_h), columns [H:] sum over H (-> x_w^T);
    # the exact 1/W, 1/H means are recovered by the f32 scale row afterwards.
    sums = jnp.dot(x.astype(mm), pmat_ref[...], preferred_element_type=f32)
    pools = (sums * inv_ref[...]).reshape(bn, C, H + W)            # (bn, C, H+W) f32

    # conv1 (1x1, eval-mode BN folded) + ReLU.  Tiny; stays in f32.
    y = jnp.einsum('mc,bcp->bmp', w1_ref[...], pools) + b1_ref[...][None]
    y = jnp.maximum(y, 0.0)                                        # (bn, mip, H+W)

    # conv_h / conv_w (1x1) + sigmoid gates.
    a_h = jax.nn.sigmoid(jnp.einsum('cm,bmh->bch', wh_ref[...], y[:, :, :H])
                         + bh_ref[...][None])                      # (bn, C, H)
    a_w = jax.nn.sigmoid(jnp.einsum('cm,bmw->bcw', ww_ref[...], y[:, :, H:])
                         + bw_ref[...][None])                      # (bn, C, W)

    # Expand gates back to lane-dense (bn*C, HW), kept in the matmul dtype.
    a_h2 = a_h.reshape(rows, H).astype(mm)
    a_w2 = a_w.reshape(rows, W).astype(mm)
    gh = jnp.dot(a_h2, eh_ref[...])            # exact 0/1 expansion matmul
    if gw_by_tile:
        gw = jnp.tile(a_w2, (1, H))            # HW ordering is h*W+w -> tile H copies
    else:
        gw = jnp.dot(a_w2, ew_ref[...])        # exact 0/1 expansion fallback (small W)

    # Fused gate product + output store:  identity * a_h * a_w.
    o_ref[...] = (x * (gh * gw)).astype(o_ref.dtype)


def _vmem_capacity_bytes():
    try:
        return int(pltpu.get_tpu_info().vmem_capacity_bytes)
    except Exception:
        return 64 * 1024 * 1024        # conservative default (v7x has 64 MiB per TC)


def coord_attention(x, params, *, matmul_dtype=None, max_block_bytes=16 * 1024 * 1024):
    """CoordAttention forward.  x: (N, C, H, W);
    params: (w1, b1, bn_scale, bn_shift, wh, bh, ww, bw) with eval-mode BN folded
    into (bn_scale, bn_shift)."""
    N, C, H, W = map(int, x.shape)
    HW = H * W
    w1, b1, bn_scale, bn_shift, wh, bh, ww, bw = params

    # Dtype of the big MXU matmuls / gate temporaries.  bf16 halves the gate scratch
    # and runs the HW-length contraction at full MXU rate (biggest win on v5e);
    # default keeps exact f32 when the input is f32.
    if matmul_dtype is None:
        matmul_dtype = jnp.bfloat16 if x.dtype == jnp.bfloat16 else jnp.float32
    mm_dtype = jnp.dtype(matmul_dtype)

    # Fold eval-mode BatchNorm into conv1.
    f32 = jnp.float32
    w1f = (bn_scale * w1).astype(f32)                      # (mip, C)
    b1f = (bn_scale * b1 + bn_shift).astype(f32)           # (mip, 1)
    whf, bhf = wh.astype(f32), bh.astype(f32)
    wwf, bwf = ww.astype(f32), bw.astype(f32)

    # Constant matrices.  pmat / eh (/ ew) are exact 0/1 indicators (safe in bf16);
    # the 1/W, 1/H pooling scales live in a separate f32 row applied post-matmul.
    hw = jnp.arange(HW)
    h_of, w_of = hw // W, hw % W
    pmat = jnp.concatenate(
        [(h_of[:, None] == jnp.arange(H)[None, :]),
         (w_of[:, None] == jnp.arange(W)[None, :])], axis=1).astype(mm_dtype)   # (HW, H+W)
    inv = jnp.concatenate([jnp.full((H,), 1.0 / W, f32),
                           jnp.full((W,), 1.0 / H, f32)])[None, :]              # (1, H+W)
    eh = (jnp.arange(H)[:, None] == h_of[None, :]).astype(mm_dtype)             # (H, HW)

    # w-gate expansion: lane-tile H copies when W is lane-aligned (no constant,
    # no MXU work); otherwise fall back to a tiny exact 0/1 expansion matmul.
    gw_by_tile = (W % 128 == 0)
    weights = [pmat, inv, w1f, b1f, whf, bhf, wwf, bwf, eh]
    if not gw_by_tile:
        ew = (jnp.arange(W)[:, None] == w_of[None, :]).astype(mm_dtype)         # (W, HW)
        weights.append(ew)

    # ---- generation-aware VMEM budget & batch-block size ----------------------
    vmem_cap = _vmem_capacity_bytes()             # 64 MiB (v7x) / 128 MiB (v5e, v6e)
    vmem_target = int(vmem_cap * 0.80)            # leave compiler / DMA headroom
    x_item = x.dtype.itemsize
    mm_item = mm_dtype.itemsize
    # Constants/weights use the default (double-buffered) pipeline -> count 2x bytes.
    const_bytes = 2 * sum(int(a.size) * a.dtype.itemsize for a in weights)
    # Per image: in + out blocks (double-buffered) + gh/gw/product temporaries.
    per_image = C * HW * (4 * x_item + 4 * mm_item)

    valid = [d for d in range(1, N + 1)
             if N % d == 0 and (d == N or (d * C) % 8 == 0)]    # (8,128) sublane rule

    def fits(d):
        return (const_bytes + d * per_image <= vmem_target
                and d * C * HW * x_item <= max_block_bytes)

    fitting = [d for d in valid if fits(d)]
    if fitting:
        bn = max(fitting)
        # Prefer >= 2 grid steps (keeps both v7x TensorCores busy) only when the
        # block stays large enough to sit near the HBM roofline.
        multi = [d for d in fitting if N // d >= 2 and d * C * HW * x_item >= (1 << 20)]
        if N // bn < 2 and multi:
            bn = max(multi)
    else:
        bn = min(valid)   # TODO(synk): needs HW-chunked pooling for this regime.
    grid_n = N // bn

    est = const_bytes + bn * per_image + (4 << 20)
    vmem_limit = int(min(max(est, 32 << 20), vmem_cap))

    def full_spec(a):
        nd = a.ndim
        return pl.BlockSpec(a.shape, lambda n, _nd=nd: (0,) * _nd)

    kernel = functools.partial(_coord_att_kernel, bn=bn, C=C, H=H, W=W,
                               gw_by_tile=gw_by_tile)
    x2d = x.reshape(N * C, HW)
    out2d = pl.pallas_call(
        kernel,
        out_shape=jax.ShapeDtypeStruct((N * C, HW), x.dtype),
        grid_spec=pltpu.PrefetchScalarGridSpec(
            num_scalar_prefetch=0,
            grid=(grid_n,),
            in_specs=[pl.BlockSpec((bn * C, HW), lambda n: (n, 0))]
                     + [full_spec(a) for a in weights],
            out_specs=pl.BlockSpec((bn * C, HW), lambda n: (n, 0)),
        ),
        compiler_params=pltpu.CompilerParams(
            dimension_semantics=("parallel",),
            vmem_limit_bytes=vmem_limit),
    )(x2d, *weights)
    return out2d.reshape(N, C, H, W)


if __name__ == "__main__":
    key = jax.random.PRNGKey(0)
    N, C, H, W = 2, 4, 16, 16
    reduction = 32
    mip = max(8, C // reduction)
    eps = 1e-5

    ks = jax.random.split(key, 11)
    x = jax.random.normal(ks[0], (N, C, H, W), jnp.float32)

    # Deterministic synthetic parameters (shapes per the module's __init__).
    w1 = jax.random.normal(ks[1], (mip, C), jnp.float32) * 0.1       # conv1 weight (mip,C,1,1)
    b1 = jax.random.normal(ks[2], (mip, 1), jnp.float32) * 0.1       # conv1 bias
    gamma = 1.0 + jax.random.normal(ks[3], (mip, 1), jnp.float32) * 0.1
    beta = jax.random.normal(ks[4], (mip, 1), jnp.float32) * 0.1
    rmean = jax.random.normal(ks[5], (mip, 1), jnp.float32) * 0.1
    rvar = jnp.abs(jax.random.normal(ks[6], (mip, 1), jnp.float32)) * 0.1 + 1.0
    bn_scale = gamma * jax.lax.rsqrt(rvar + eps)                     # folded eval-mode BN
    bn_shift = beta - rmean * bn_scale
    wh = jax.random.normal(ks[7], (C, mip), jnp.float32) * 0.1       # conv_h weight (C,mip,1,1)
    bh = jax.random.normal(ks[8], (C, 1), jnp.float32) * 0.1
    ww = jax.random.normal(ks[9], (C, mip), jnp.float32) * 0.1       # conv_w weight (C,mip,1,1)
    bw = jax.random.normal(ks[10], (C, 1), jnp.float32) * 0.1

    params = (w1, b1, bn_scale, bn_shift, wh, bh, ww, bw)
    out = jax.block_until_ready(coord_attention(x, params))

    # Pure-JAX reference (same semantics as the PyTorch forward, eval-mode BN).
    ph = jnp.mean(x, axis=3)                               # (N, C, H)
    pw = jnp.mean(x, axis=2)                               # (N, C, W)
    yh = jnp.einsum('mc,nch->nmh', w1, ph) + b1[None]
    yw = jnp.einsum('mc,ncw->nmw', w1, pw) + b1[None]
    yh = jnp.maximum(yh * bn_scale[None] + bn_shift[None], 0.0)
    yw = jnp.maximum(yw * bn_scale[None] + bn_shift[None], 0.0)
    a_h = jax.nn.sigmoid(jnp.einsum('cm,nmh->nch', wh, yh) + bh[None])
    a_w = jax.nn.sigmoid(jnp.einsum('cm,nmw->ncw', ww, yw) + bw[None])
    ref = x * a_h[:, :, :, None] * a_w[:, :, None, :]

    assert out.shape == (N, C, H, W) and out.dtype == x.dtype
    assert jnp.allclose(out, ref, atol=2e-3, rtol=2e-3), \
        float(jnp.max(jnp.abs(out - ref)))

    # Exercise the bf16 fast path (v5e-oriented): lossy pooling/gates, loose tolerance.
    out_bf16 = jax.block_until_ready(
        coord_attention(x, params, matmul_dtype=jnp.bfloat16))
    assert jnp.allclose(out_bf16, ref, atol=5e-2, rtol=5e-2)

    print("KERNEL_OK")
</pallas_src>

<mosaic_0001>
module attributes {stable_mosaic.version = 11 : i64} {
  func.func @_coord_att_kernel(%arg0: i32, %arg1: memref<8x256xf32, #tpu.memory_space<vmem>>, %arg2: memref<256x32xf32, #tpu.memory_space<vmem>>, %arg3: memref<1x32xf32, #tpu.memory_space<vmem>>, %arg4: memref<8x4xf32, #tpu.memory_space<vmem>>, %arg5: memref<8x1xf32, #tpu.memory_space<vmem>>, %arg6: memref<4x8xf32, #tpu.memory_space<vmem>>, %arg7: memref<4x1xf32, #tpu.memory_space<vmem>>, %arg8: memref<4x8xf32, #tpu.memory_space<vmem>>, %arg9: memref<4x1xf32, #tpu.memory_space<vmem>>, %arg10: memref<16x256xf32, #tpu.memory_space<vmem>>, %arg11: memref<16x256xf32, #tpu.memory_space<vmem>>, %arg12: memref<8x256xf32, #tpu.memory_space<vmem>>) attributes {dimension_semantics = [#tpu.dimension_semantics<parallel>], iteration_bounds = array<i64: 1>, scalar_prefetch = 0 : i64, scratch_operands = 0 : i64, tpu.core_type = #tpu.core_type<tc>, window_params = [{transform_indices = @transform_0, window_bounds = array<i64: 8, 256>}, {pipeline_mode = #tpu.pipeline_mode<synchronous>, transform_indices = @transform_1, window_bounds = array<i64: 256, 32>}, {pipeline_mode = #tpu.pipeline_mode<synchronous>, transform_indices = @transform_2, window_bounds = array<i64: 1, 32>}, {pipeline_mode = #tpu.pipeline_mode<synchronous>, transform_indices = @transform_3, window_bounds = array<i64: 8, 4>}, {pipeline_mode = #tpu.pipeline_mode<synchronous>, transform_indices = @transform_4, window_bounds = array<i64: 8, 1>}, {pipeline_mode = #tpu.pipeline_mode<synchronous>, transform_indices = @transform_5, window_bounds = array<i64: 4, 8>}, {pipeline_mode = #tpu.pipeline_mode<synchronous>, transform_indices = @transform_6, window_bounds = array<i64: 4, 1>}, {pipeline_mode = #tpu.pipeline_mode<synchronous>, transform_indices = @transform_7, window_bounds = array<i64: 4, 8>}, {pipeline_mode = #tpu.pipeline_mode<synchronous>, transform_indices = @transform_8, window_bounds = array<i64: 4, 1>}, {pipeline_mode = #tpu.pipeline_mode<synchronous>, transform_indices = @transform_9, window_bounds = array<i64: 16, 256>}, {pipeline_mode = #tpu.pipeline_mode<synchronous>, transform_indices = @transform_10, window_bounds = array<i64: 16, 256>}, {transform_indices = @transform_11, window_bounds = array<i64: 8, 256>}]} {
    %c0 = arith.constant 0 : index
    %c0_0 = arith.constant 0 : index
    %0 = vector.load %arg1[%c0, %c0_0] : memref<8x256xf32, #tpu.memory_space<vmem>>, vector<8x256xf32>
    %c0_1 = arith.constant 0 : index
    %c0_2 = arith.constant 0 : index
    %1 = vector.load %arg2[%c0_1, %c0_2] : memref<256x32xf32, #tpu.memory_space<vmem>>, vector<256x32xf32>
    %cst = arith.constant dense<0.000000e+00> : vector<8x32xf32>
    %2 = tpu.matmul %0, %1, %cst {dimension_numbers = #tpu.dot_dimension_numbers<[1], [0], [0], [1], [0, 0, 1, 1], [], []>} : vector<8x256xf32>, vector<256x32xf32>, vector<8x32xf32> -> vector<8x32xf32>
    %c0_3 = arith.constant 0 : index
    %c0_4 = arith.constant 0 : index
    %3 = vector.load %arg3[%c0_3, %c0_4] : memref<1x32xf32, #tpu.memory_space<vmem>>, vector<1x32xf32>
    %4 = vector.broadcast %3 : vector<1x32xf32> to vector<8x32xf32>
    %5 = arith.mulf %2, %4 : vector<8x32xf32>
    %6 = vector.shape_cast %5 : vector<8x32xf32> to vector<2x4x32xf32>
    %c0_5 = arith.constant 0 : index
    %c0_6 = arith.constant 0 : index
    %7 = vector.load %arg4[%c0_5, %c0_6] : memref<8x4xf32, #tpu.memory_space<vmem>>, vector<8x4xf32>
    "tpu.trace_start"() <{level = 10 : i32, message = "mc,bcp->bmp"}> : () -> ()
    %cst_7 = arith.constant dense<0.000000e+00> : vector<2x32x8xf32>
    %8 = tpu.matmul %6, %7, %cst_7 {dimension_numbers = #tpu.dot_dimension_numbers<[1], [1], [0, 2], [0], [0, 0, 0, 2, 1, 0], [], []>} : vector<2x4x32xf32>, vector<8x4xf32>, vector<2x32x8xf32> -> vector<2x32x8xf32>
    %9 = tpu.transpose %8, [0, 2, 1] : vector<2x32x8xf32> -> vector<2x8x32xf32>
    "tpu.trace_stop"() : () -> ()
    %c0_8 = arith.constant 0 : index
    %c0_9 = arith.constant 0 : index
    %10 = vector.load %arg5[%c0_8, %c0_9] : memref<8x1xf32, #tpu.memory_space<vmem>>, vector<8x1xf32>
    %11 = vector.shape_cast %10 : vector<8x1xf32> to vector<1x8x1xf32>
    %12 = vector.broadcast %11 : vector<1x8x1xf32> to vector<2x8x32xf32>
    %13 = arith.addf %9, %12 : vector<2x8x32xf32>
    %cst_10 = arith.constant 0.000000e+00 : f32
    %14 = vector.broadcast %cst_10 : f32 to vector<2x8x32xf32>
    %15 = arith.maximumf %13, %14 : vector<2x8x32xf32>
    %c0_11 = arith.constant 0 : index
    %c0_12 = arith.constant 0 : index
    %16 = vector.load %arg6[%c0_11, %c0_12] : memref<4x8xf32, #tpu.memory_space<vmem>>, vector<4x8xf32>
    %17 = vector.extract_strided_slice %15 {offsets = [0, 0, 0], sizes = [2, 8, 16], strides = [1, 1, 1]} : vector<2x8x32xf32> to vector<2x8x16xf32>
    "tpu.trace_start"() <{level = 10 : i32, message = "cm,bmh->bch"}> : () -> ()
    %cst_13 = arith.constant dense<0.000000e+00> : vector<2x16x4xf32>
    %18 = tpu.matmul %17, %16, %cst_13 {dimension_numbers = #tpu.dot_dimension_numbers<[1], [1], [0, 2], [0], [0, 0, 0, 2, 1, 0], [], []>} : vector<2x8x16xf32>, vector<4x8xf32>, vector<2x16x4xf32> -> vector<2x16x4xf32>
    %19 = tpu.transpose %18, [0, 2, 1] : vector<2x16x4xf32> -> vector<2x4x16xf32>
    "tpu.trace_stop"() : () -> ()
    %c0_14 = arith.constant 0 : index
    %c0_15 = arith.constant 0 : index
    %20 = vector.load %arg7[%c0_14, %c0_15] : memref<4x1xf32, #tpu.memory_space<vmem>>, vector<4x1xf32>
    %21 = vector.shape_cast %20 : vector<4x1xf32> to vector<1x4x1xf32>
    %22 = vector.broadcast %21 : vector<1x4x1xf32> to vector<2x4x16xf32>
    %23 = arith.addf %19, %22 : vector<2x4x16xf32>
    %24 = arith.negf %23 : vector<2x4x16xf32>
    %25 = math.exp %24 : vector<2x4x16xf32>
    %cst_16 = arith.constant 1.000000e+00 : f32
    %26 = vector.broadcast %cst_16 : f32 to vector<2x4x16xf32>
    %27 = arith.addf %26, %25 : vector<2x4x16xf32>
    %28 = arith.divf %26, %27 : vector<2x4x16xf32>
    %c0_17 = arith.constant 0 : index
    %c0_18 = arith.constant 0 : index
    %29 = vector.load %arg8[%c0_17, %c0_18] : memref<4x8xf32, #tpu.memory_space<vmem>>, vector<4x8xf32>
    %30 = vector.extract_strided_slice %15 {offsets = [0, 0, 16], sizes = [2, 8, 16], strides = [1, 1, 1]} : vector<2x8x32xf32> to vector<2x8x16xf32>
    "tpu.trace_start"() <{level = 10 : i32, message = "cm,bmw->bcw"}> : () -> ()
    %cst_19 = arith.constant dense<0.000000e+00> : vector<2x16x4xf32>
    %31 = tpu.matmul %30, %29, %cst_19 {dimension_numbers = #tpu.dot_dimension_numbers<[1], [1], [0, 2], [0], [0, 0, 0, 2, 1, 0], [], []>} : vector<2x8x16xf32>, vector<4x8xf32>, vector<2x16x4xf32> -> vector<2x16x4xf32>
    %32 = tpu.transpose %31, [0, 2, 1] : vector<2x16x4xf32> -> vector<2x4x16xf32>
    "tpu.trace_stop"() : () -> ()
    %c0_20 = arith.constant 0 : index
    %c0_21 = arith.constant 0 : index
    %33 = vector.load %arg9[%c0_20, %c0_21] : memref<4x1xf32, #tpu.memory_space<vmem>>, vector<4x1xf32>
    %34 = vector.shape_cast %33 : vector<4x1xf32> to vector<1x4x1xf32>
    %35 = vector.broadcast %34 : vector<1x4x1xf32> to vector<2x4x16xf32>
    %36 = arith.addf %32, %35 : vector<2x4x16xf32>
    %37 = arith.negf %36 : vector<2x4x16xf32>
    %38 = math.exp %37 : vector<2x4x16xf32>
    %cst_22 = arith.constant 1.000000e+00 : f32
    %39 = vector.broadcast %cst_22 : f32 to vector<2x4x16xf32>
    %40 = arith.addf %39, %38 : vector<2x4x16xf32>
    %41 = arith.divf %39, %40 : vector<2x4x16xf32>
    %42 = vector.shape_cast %28 : vector<2x4x16xf32> to vector<8x16xf32>
    %43 = vector.shape_cast %41 : vector<2x4x16xf32> to vector<8x16xf32>
    %c0_23 = arith.constant 0 : index
    %c0_24 = arith.constant 0 : index
    %44 = vector.load %arg10[%c0_23, %c0_24] : memref<16x256xf32, #tpu.memory_space<vmem>>, vector<16x256xf32>
    %cst_25 = arith.constant dense<0.000000e+00> : vector<8x256xf32>
    %45 = tpu.matmul %42, %44, %cst_25 {dimension_numbers = #tpu.dot_dimension_numbers<[1], [0], [0], [1], [0, 0, 1, 1], [], []>} : vector<8x16xf32>, vector<16x256xf32>, vector<8x256xf32> -> vector<8x256xf32>
    %c0_26 = arith.constant 0 : index
    %c0_27 = arith.constant 0 : index
    %46 = vector.load %arg11[%c0_26, %c0_27] : memref<16x256xf32, #tpu.memory_space<vmem>>, vector<16x256xf32>
    %cst_28 = arith.constant dense<0.000000e+00> : vector<8x256xf32>
    %47 = tpu.matmul %43, %46, %cst_28 {dimension_numbers = #tpu.dot_dimension_numbers<[1], [0], [0], [1], [0, 0, 1, 1], [], []>} : vector<8x16xf32>, vector<16x256xf32>, vector<8x256xf32> -> vector<8x256xf32>
    %48 = arith.mulf %45, %47 : vector<8x256xf32>
    %49 = arith.mulf %0, %48 : vector<8x256xf32>
    %c0_29 = arith.constant 0 : index
    %c0_30 = arith.constant 0 : index
    %50 = vector.load %arg12[%c0_29, %c0_30] : memref<8x256xf32, #tpu.memory_space<vmem>>, vector<8x256xf32>
    tpu.vector_store %arg12[%c0_29, %c0_30], %49 {strides = array<i32>} : memref<8x256xf32, #tpu.memory_space<vmem>>, vector<8x256xf32>,
    return
  }
  func.func @transform_0(%arg0: i32) -> (i32, i32) {
    %c0_i32 = arith.constant 0 : i32
    %c0_i32_0 = arith.constant 0 : i32
    return %arg0, %c0_i32 : i32, i32
  }
  func.func @transform_1(%arg0: i32) -> (i32, i32) {
    %c0_i32 = arith.constant 0 : i32
    %c0_i32_0 = arith.constant 0 : i32
    %c0_i32_1 = arith.constant 0 : i32
    return %c0_i32, %c0_i32_0 : i32, i32
  }
  func.func @transform_2(%arg0: i32) -> (i32, i32) {
    %c0_i32 = arith.constant 0 : i32
    %c0_i32_0 = arith.constant 0 : i32
    %c0_i32_1 = arith.constant 0 : i32
    return %c0_i32, %c0_i32_0 : i32, i32
  }
  func.func @transform_3(%arg0: i32) -> (i32, i32) {
    %c0_i32 = arith.constant 0 : i32
    %c0_i32_0 = arith.constant 0 : i32
    %c0_i32_1 = arith.constant 0 : i32
    return %c0_i32, %c0_i32_0 : i32, i32
  }
  func.func @transform_4(%arg0: i32) -> (i32, i32) {
    %c0_i32 = arith.constant 0 : i32
    %c0_i32_0 = arith.constant 0 : i32
    %c0_i32_1 = arith.constant 0 : i32
    return %c0_i32, %c0_i32_0 : i32, i32
  }
  func.func @transform_5(%arg0: i32) -> (i32, i32) {
    %c0_i32 = arith.constant 0 : i32
    %c0_i32_0 = arith.constant 0 : i32
    %c0_i32_1 = arith.constant 0 : i32
    return %c0_i32, %c0_i32_0 : i32, i32
  }
  func.func @transform_6(%arg0: i32) -> (i32, i32) {
    %c0_i32 = arith.constant 0 : i32
    %c0_i32_0 = arith.constant 0 : i32
    %c0_i32_1 = arith.constant 0 : i32
    return %c0_i32, %c0_i32_0 : i32, i32
  }
  func.func @transform_7(%arg0: i32) -> (i32, i32) {
    %c0_i32 = arith.constant 0 : i32
    %c0_i32_0 = arith.constant 0 : i32
    %c0_i32_1 = arith.constant 0 : i32
    return %c0_i32, %c0_i32_0 : i32, i32
  }
  func.func @transform_8(%arg0: i32) -> (i32, i32) {
    %c0_i32 = arith.constant 0 : i32
    %c0_i32_0 = arith.constant 0 : i32
    %c0_i32_1 = arith.constant 0 : i32
    return %c0_i32, %c0_i32_0 : i32, i32
  }
  func.func @transform_9(%arg0: i32) -> (i32, i32) {
    %c0_i32 = arith.constant 0 : i32
    %c0_i32_0 = arith.constant 0 : i32
    %c0_i32_1 = arith.constant 0 : i32
    return %c0_i32, %c0_i32_0 : i32, i32
  }
  func.func @transform_10(%arg0: i32) -> (i32, i32) {
    %c0_i32 = arith.constant 0 : i32
    %c0_i32_0 = arith.constant 0 : i32
    %c0_i32_1 = arith.constant 0 : i32
    return %c0_i32, %c0_i32_0 : i32, i32
  }
  func.func @transform_11(%arg0: i32) -> (i32, i32) {
    %c0_i32 = arith.constant 0 : i32
    %c0_i32_0 = arith.constant 0 : i32
    return %arg0, %c0_i32 : i32, i32
  }
}

</mosaic_0001>

<bundles_post_ra>
// kernel: tpu_custom_call.1
= control target key start
LH: loop header
LB: loop body
LE: loop exit
PB: predicated region body
PF: predicated region fallthrough
CT: control target
= control target key end

     0   :  { %s1567_s0 = inlined_call_operand.vmem [shape: f32[8,256], index: 0, kind: input, shape index: {}]   ;;  %s1568_s1 = inlined_call_operand.vmem [shape: f32[256,32], index: 1, kind: input, shape index: {}]   ;;  %s1569_s2 = inlined_call_operand.vmem [shape: f32[1,32], index: 2, kind: input, shape index: {}]   ;;  %s1570_s3 = inlined_call_operand.vmem [shape: f32[8,4], index: 3, kind: input, shape index: {}]   ;;  %s1571_s4 = inlined_call_operand.vmem [shape: f32[8,1], index: 4, kind: input, shape index: {}]   ;;  %s1572_s5 = inlined_call_operand.vmem [shape: f32[4,8], index: 5, kind: input, shape index: {}]   ;;  %s1573_s6 = inlined_call_operand.vmem [shape: f32[4,1], index: 6, kind: input, shape index: {}]   ;;  %s1574_s7 = inlined_call_operand.vmem [shape: f32[4,8], index: 7, kind: input, shape index: {}]   ;;  %s1575_s8 = inlined_call_operand.vmem [shape: f32[4,1], index: 8, kind: input, shape index: {}]   ;;  %s1576_s9 = inlined_call_operand.vmem [shape: f32[16,256], index: 9, kind: input, shape index: {}]   ;;  %s1577_s10 = inlined_call_operand.vmem [shape: f32[16,256], index: 10, kind: input, shape index: {}]   ;;  %s1578_s11 = inlined_call_operand.hbm [shape: f32[8,256], index: 11, kind: output, shape index: {}]  }
   0x1   :  { %v57_v0 = vld [vmem:[%s1568_s1 + $0x80] sm:$0xff]  ;;  %v58_v1 = vld [vmem:[%s1568_s1 + $0x88] sm:$0xff]  ;;  %v59_v5 = vld [vmem:[%s1568_s1 + $0x90] sm:$0xff] }
   0x2   :  { %v41_v2 = vld [vmem:[%s1568_s1] sm:$0xff]  ;;  %v1224_v3 = vpack.c.bf16 %v58_v1, %v57_v0  ;;  %v42_v4 = vld [vmem:[%s1568_s1 + $0x8] sm:$0xff]  ;;  %v60_v6 = vld [vmem:[%s1568_s1 + $0x98] sm:$0xff] }
   0x3   :  { %v1226_v7 = vpack.c.bf16 %v42_v4, %v41_v2  ;;  %v1228_v8 = vpack.c.bf16 %v60_v6, %v59_v5  ;;  %v43_v9 = vld [vmem:[%s1568_s1 + $0x10] sm:$0xff]  ;;  %v44_v10 = vld [vmem:[%s1568_s1 + $0x18] sm:$0xff]  ;;  %v61_v11 = vld [vmem:[%s1568_s1 + $0xa0] sm:$0xff] }
   0x4   :  { %1225 = vmatprep.subr.bf16.mxu0 %v1224_v3  ;;  %v62_v12 = vld [vmem:[%s1568_s1 + $0xa8] sm:$0xff]  ;;  %v1230_v13 = vpack.c.bf16 %v44_v10, %v43_v9  ;;  %v45_v15 = vld [vmem:[%s1568_s1 + $0x20] sm:$0xff]  ;;  %v63_v17 = vld [vmem:[%s1568_s1 + $0xb0] sm:$0xff] }
   0x5   :  { %1227 = vmatpush3.bf16.msra.mxu0 %v1226_v7  ;;  %v1232_v14 = vpack.c.bf16 %v62_v12, %v61_v11  ;;  %v46_v16 = vld [vmem:[%s1568_s1 + $0x28] sm:$0xff]  ;;  %v64_v18 = vld [vmem:[%s1568_s1 + $0xb8] sm:$0xff]  ;;  %v47_v21 = vld [vmem:[%s1568_s1 + $0x30] sm:$0xff] }
   0x6   :  { %1229 = vmatprep.subr.bf16.mxu0 %v1228_v8  ;;  %v1234_v19 = vpack.c.bf16 %v46_v16, %v45_v15  ;;  %v1236_v20 = vpack.c.bf16 %v64_v18, %v63_v17  ;;  %v48_v22 = vld [vmem:[%s1568_s1 + $0x38] sm:$0xff]  ;;  %v65_v23 = vld [vmem:[%s1568_s1 + $0xc0] sm:$0xff]  ;;  %v66_v24 = vld [vmem:[%s1568_s1 + $0xc8] sm:$0xff] }
   0x7   :  { %v1431_v25 = vld [vmem:[%s1567_s0 + $0x8] sm:$0xff] }
   0x8   :  { %137 = vmatprep.mubr.f32.mxu0 %v1431_v25 }
   0x9   :  { %1231 = vmatpush3.bf16.msra.mxu0 %v1230_v13 }
   0xa   :  { %1233 = vmatprep.subr.bf16.mxu0 %v1232_v14 }
   0xb   :  { %16 = vsyncpa [#allocation3], 0  ;;  %v1238_v26 = vpack.c.bf16 %v48_v22, %v47_v21  ;;  %v1240_v27 = vpack.c.bf16 %v66_v24, %v65_v23  ;;  %v49_v28 = vld [vmem:[%s1568_s1 + $0x40] sm:$0xff]  ;;  %v50_v29 = vld [vmem:[%s1568_s1 + $0x48] sm:$0xff]  ;;  %vm219_vm0 = vcmask 31744   ;;  %v1310_v58 = vmov 0  }
   0xc   :  { %v67_v30 = vld [vmem:[%s1568_s1 + $0xd0] sm:$0xff]  ;;  %v68_v31 = vld [vmem:[%s1568_s1 + $0xd8] sm:$0xff]  ;;  %v1242_v32 = vpack.c.bf16 %v50_v29, %v49_v28  ;;  %v69_v36 = vld [vmem:[%s1568_s1 + $0xe0] sm:$0xff]  ;;  %1268 = vset.pattern.permute.xlu1 %v1310_v58  ;;  %vm491_vm1 = vcmask 64512   ;;  %vm940_vm2 = vcmask 130048  }
   0xd   :  { %1235 = vmatpush3.bf16.msra.mxu0 %v1234_v19  ;;  %v1244_v33 = vpack.c.bf16 %v68_v31, %v67_v30  ;;  %v51_v34 = vld [vmem:[%s1568_s1 + $0x50] sm:$0xff]  ;;  %v52_v35 = vld [vmem:[%s1568_s1 + $0x58] sm:$0xff]  ;;  %v70_v37 = vld [vmem:[%s1568_s1 + $0xe8] sm:$0xff] }
   0xe   :  { %1237 = vmatprep.subr.bf16.mxu0 %v1236_v20  ;;  %v1246_v38 = vpack.c.bf16 %v52_v35, %v51_v34  ;;  %v1248_v39 = vpack.c.bf16 %v70_v37, %v69_v36  ;;  %v53_v40 = vld [vmem:[%s1568_s1 + $0x60] sm:$0xff]  ;;  %v54_v41 = vld [vmem:[%s1568_s1 + $0x68] sm:$0xff]  ;;  %v71_v42 = vld [vmem:[%s1568_s1 + $0xf0] sm:$0xff] }
   0xf   :  { %v72_v43 = vld [vmem:[%s1568_s1 + $0xf8] sm:$0xff]  ;;  %v1250_v44 = vpack.c.bf16 %v54_v41, %v53_v40  ;;  %v55_v46 = vld [vmem:[%s1568_s1 + $0x70] sm:$0xff]  ;;  %v1479_v49 = vld [vmem:[%s1567_s0] sm:$0xff] }
  0x10   :  { %v1252_v45 = vpack.c.bf16 %v72_v43, %v71_v42  ;;  %v56_v47 = vld [vmem:[%s1568_s1 + $0x78] sm:$0xff]  ;;  %v1114_v52 = vld [vmem:[%s1569_s2] ss:$0 sm:$0xff]  ;;  %s1311_s2 = smov 112   ;;  %v935_v43 = vld [vmem:[%s1576_s9 + $0x10] sm:$0xff] }
  0x11   :  { %1239 = vmatpush3.bf16.msra.mxu0 %v1238_v26  ;;  %v1254_v48 = vpack.c.bf16 %v56_v47, %v55_v46  ;;  %v154_v55 = vld [vmem:[%s1570_s3] sm:$0xff]  ;;  %v936_v40 = vld [vmem:[%s1576_s9 + $0x18] sm:$0xff] }
  0x12   :  { %1241 = vmatprep.subr.bf16.mxu0 %v1240_v27  ;;  %1194 = vmatprep.subr.msk.mxu1 %vm219_vm0, %v154_v55  ;;  %v416_v57 = vld [vmem:[%s1571_s4] sm:$0xff] }
  0x13   :  { %1195 = vmatpush3.xpose.msk.msra.mxu1 %vm219_vm0, %v154_v55  ;;  %419 = vperm.xlu1 %1268, %v416_v57   ;;  %v426_v18 = vld [vmem:[%s1572_s5] sm:$0xf] }
  0x14   :  { %1208 = vmatprep.subr.msk.mxu1 %vm491_vm1, %v426_v18  ;;  %v913_v19 = vld [vmem:[%s1575_s8] sm:$0xf] }
  0x15   :  { %1243 = vmatpush3.bf16.msra.mxu0 %v1242_v32  ;;  %v676_v21 = vld [vmem:[%s1574_s7] sm:$0xf] }
  0x16   :  { %1245 = vmatprep.subr.bf16.mxu0 %v1244_v33  ;;  %v656_v26 = vld [vmem:[%s1573_s6] sm:$0xf] }
  0x17   :  { %v933_v42 = vld [vmem:[%s1576_s9] sm:$0xff] }
  0x19   :  { %1247 = vmatpush3.bf16.msra.mxu0 %v1246_v38 }
  0x1a   :  { %1249 = vmatprep.subr.bf16.mxu0 %v1248_v39  ;;  %v934_v39 = vld [vmem:[%s1576_s9 + $0x8] sm:$0xff] }
  0x1b   :  { %v1256_v41 = vpack.c.bf16 %v936_v40, %v934_v39 }
  0x1d   :  { %1251 = vmatpush3.bf16.msra.mxu0 %v1250_v44  ;;  %v1258_v44 = vpack.c.bf16 %v935_v43, %v933_v42 }
  0x1e   :  { %1253 = vmatprep.subr.bf16.mxu0 %v1252_v45  ;;  %v1312_v45 = vmov 0.0  }
  0x21   :  { %1255 = vmatpush3.bf16.msra.mxu0 %v1254_v48  ;;  %v1015_v48 = vld [vmem:[%s1577_s10 + $0x8] sm:$0xff] }
  0x22   :  { %1257 = vmatprep.subr.bf16.mxu0 %v1256_v41 }
  0x24   :  { %138 = vmatmul.mubr.f32.vlgmr.msra.gmra.mrb[0].mxu0 %v1479_v49 }
  0x25   :  { %1259 = vmatpush1.bf16.msra.mxu0 %v1258_v44  ;;  %1007 = vmatprep.mubr.f32.mxu0 %v1312_v45 }
  0x92   :  { %v420_v11 = vpop.permute.xlu1 %419 }
  0xf7   :  { %v1172_v50 = vpop.f32.mrb[0].mxu0 }
  0xf8   :  { %v1173_v51 = vpop.f32.mrb[1].mxu0 }
  0xf9   :  { %v1174_v53 = vadd.f32 %v1173_v51, %v1172_v50  ;;  %v1017_v50 = vld [vmem:[%s1577_s10 + $0x18] sm:$0xff] }
  0xfa   :  { %v1260_v51 = vpack.c.bf16 %v1017_v50, %v1015_v48 }
  0xfb   :  { %v150_v54 = vmul.f32 %v1174_v53, %v1114_v52  ;;  %v1014_v52 = vld [vmem:[%s1577_s10] sm:$0xff]  ;;  %v1016_v53 = vld [vmem:[%s1577_s10 + $0x10] sm:$0xff]  ;;  %s1313_s10 = smov [#allocation2]  }
  0xfc   :  { %s1106_s1 = sshll.u32 %s1313_s10, 4  ;;  %s1107_s1 = int_to_ptr.vmem [resolvable:$true] %s1106_s1 }
  0xfd   :  { %155 = vxpose.xlu0.b32.start.end [1/1] (short) (narrow) %v150_v54, 32  ;;  %v152_v56 = vcombine.high %v150_v54, %v150_v54  ;;  %v1262_v54 = vpack.c.bf16 %v1016_v53, %v1014_v52  ;;  %s1286_s30 = scalar_lea.vmem %s1107_s1, 256  ;;  %p1291_p1 = scmp.lt.s32.totalorder %s1107_s1, %s1107_s1 }
  0xfe   :  { %p1287_p0 = scmp.ne.s32.totalorder %s1107_s1, %s1286_s30  ;;  %p1292_p2 = scmp.lt.s32.totalorder %s1286_s30, %s1286_s30 }
 0x100   :  { %p1293_p3 = por %p1292_p2, %p1291_p1 }
 0x102   :  { %p1294_p4 = pnand %p1293_p3, %p1287_p0 }
 0x10a   :  { %187 = vxpose.xlu0.b32.start.end [1/1] (short) (narrow) %v152_v56, 32 }
 0x17d   :  { %v171_v59 = vpop.trf.xlu0 }
 0x17e   :  { %1196 = vmatprep.mubr.msk.f32.mxu1 %vm219_vm0, %v171_v59 }
 0x181   :  { %v172_v60 = vpop.trf.xlu0 }
 0x182   :  { %1197 = vmatmul.mubr.msk.f32.vlgmr.msra.gmra.mrb[0].mxu1 %vm219_vm0, %v172_v60 }
 0x183   :  { %1209 = vmatpush3.xpose.msk.msra.mxu1 %vm491_vm1, %v426_v18 }
 0x184   :  { %1216 = vmatprep.subr.msk.mxu1 %vm491_vm1, %v676_v21 }
 0x185   :  { %v173_v61 = vpop.trf.xlu0 }
 0x186   :  { %1199 = vmatprep.mubr.msk.f32.mxu1 %vm219_vm0, %v173_v61 }
 0x189   :  { %v174_v62 = vpop.trf.xlu0 }
 0x18a   :  { %1200 = vmatmul.mubr.msk.f32.gmra.mrb[2].mxu1 %vm219_vm0, %v174_v62 }
 0x18d   :  { %v203_v63 = vpop.trf.xlu0 }
 0x18e   :  { %1202 = vmatprep.mubr.msk.f32.mxu1 %vm219_vm0, %v203_v63 }
 0x191   :  { %v204_v0 = vpop.trf.xlu0 }
 0x192   :  { %1203 = vmatmul.mubr.msk.f32.gmra.mrb[4].mxu1 %vm219_vm0, %v204_v0 }
 0x195   :  { %v205_v1 = vpop.trf.xlu0 }
 0x196   :  { %1205 = vmatprep.mubr.msk.f32.mxu1 %vm219_vm0, %v205_v1 }
 0x199   :  { %v206_v2 = vpop.trf.xlu0 }
 0x19a   :  { %1206 = vmatmul.mubr.msk.f32.gmra.mrb[6].mxu1 %vm219_vm0, %v206_v2 }
 0x255   :  { %v1198_v3 = vpop.f32.mrb[0].mxu1 }
 0x256   :  { %v313_v4 = vpop.f32.mrb[1].mxu1 }
 0x257   :  { %352 = vxpose.xlu1.b32.start [1/4] (short) (narrow) %v313_v4, 8 }
 0x25b   :  { %353 = vxpose.xlu1.b32.cont [2/4] (short) (narrow) %v1198_v3, 8 }
 0x25d   :  { %v1201_v5 = vpop.f32.mrb[2].mxu1 }
 0x25e   :  { %v323_v6 = vpop.f32.mrb[3].mxu1 }
 0x25f   :  { %354 = vxpose.xlu1.b32.cont [3/4] (short) (narrow) %v323_v6, 8 }
 0x263   :  { %355 = vxpose.xlu1.b32.end [4/4] (short) (narrow) %v1201_v5, 8 }
 0x265   :  { %v1204_v7 = vpop.f32.mrb[4].mxu1 }
 0x266   :  { %v333_v8 = vpop.f32.mrb[5].mxu1 }
 0x267   :  { %384 = vxpose.xlu0.b32.start [1/4] (short) (narrow) %v333_v8, 8 }
 0x26b   :  { %385 = vxpose.xlu0.b32.cont [2/4] (short) (narrow) %v1204_v7, 8 }
 0x26d   :  { %v1207_v9 = vpop.f32.mrb[6].mxu1 }
 0x26e   :  { %v343_v10 = vpop.f32.mrb[7].mxu1 }
 0x26f   :  { %386 = vxpose.xlu0.b32.cont [3/4] (short) (narrow) %v343_v10, 8 }
 0x273   :  { %387 = vxpose.xlu0.b32.end [4/4] (short) (narrow) %v1207_v9, 8 }
 0x2d7   :  { %v368_v12 = vpop.trf.xlu1 }
 0x2d8   :  { %v422_v13 = vadd.f32 %v420_v11, %v368_v12 }
 0x2da   :  { %v424_v14 = vmax.f32 %v422_v13, 0.0 }
 0x2dc   :  { %679 = vrot.lane.b32.xlu0 %v424_v14, %s1311_s2 }
 0x2e7   :  { %v400_v15 = vpop.trf.xlu0 }
 0x2e8   :  { %v423_v16 = vadd.f32 %v420_v11, %v400_v15 }
 0x2ea   :  { %v425_v17 = vmax.f32 %v423_v16, 0.0 }
 0x2ec   :  { %681 = vrot.lane.b32.xlu1 %v425_v17, %s1311_s2 }
 0x2fa   :  { %427 = vxpose.xlu0.b32.start.end [1/1] (short) (narrow) %v424_v14, 16 }
 0x315   :  { %459 = vxpose.xlu1.b32.start.end [1/1] (short) (narrow) %v425_v17, 16 }
 0x337   :  { %916 = vperm.xlu1 %1268, %v913_v19  }
 0x34e   :  { %v680_v20 = vpop.permute.xlu0 %679 }
 0x34f   :  { %685 = vxpose.xlu0.b32.start.end [1/1] (short) (narrow) %v680_v20, 16 }
 0x35e   :  { %v682_v22 = vpop.permute.xlu1 %681 }
 0x35f   :  { %717 = vxpose.xlu0.b32.start.end [1/1] (short) (narrow) %v682_v22, 16 }
 0x37a   :  { %v443_v23 = vpop.trf.xlu0 }
 0x37b   :  { %1210 = vmatprep.mubr.msk.f32.mxu1 %vm491_vm1, %v443_v23 }
 0x37e   :  { %v444_v24 = vpop.trf.xlu0 }
 0x37f   :  { %1211 = vmatmul.mubr.msk.f32.vlgmr.msra.gmra.mrb[8].mxu1 %vm491_vm1, %v444_v24 }
 0x380   :  { %1217 = vmatpush3.xpose.msk.msra.mxu1 %vm491_vm1, %v676_v21 }
 0x381   :  { %1261 = vmatprep.subr.bf16.mxu1 %v1260_v51 }
 0x388   :  { %1269 = vset.pattern.permute.xlu0 %v1310_v58 }
 0x38c   :  { %659 = vperm.xlu0 %1269, %v656_v26  }
 0x395   :  { %v475_v27 = vpop.trf.xlu1 }
 0x396   :  { %1213 = vmatprep.mubr.msk.f32.mxu1 %vm491_vm1, %v475_v27 }
 0x399   :  { %v476_v28 = vpop.trf.xlu1 }
 0x39a   :  { %1214 = vmatmul.mubr.msk.f32.gmra.mrb[10].mxu1 %vm491_vm1, %v476_v28 }
 0x3b6   :  { %v917_v55 = vpop.permute.xlu1 %916 }
 0x3cf   :  { %v701_v29 = vpop.trf.xlu0 }
 0x3d0   :  { %1218 = vmatprep.mubr.msk.f32.mxu1 %vm491_vm1, %v701_v29 }
 0x3d3   :  { %v702_v30 = vpop.trf.xlu0 }
 0x3d4   :  { %1219 = vmatmul.mubr.msk.f32.vlgmr.msra.gmra.mrb[12].mxu1 %vm491_vm1, %v702_v30 }
 0x3d5   :  { %1263 = vmatpush1.bf16.msra.mxu1 %v1262_v54 }
 0x3df   :  { %v733_v31 = vpop.trf.xlu0 }
 0x3e0   :  { %1221 = vmatprep.mubr.msk.f32.mxu1 %vm491_vm1, %v733_v31 }
 0x3e3   :  { %v734_v32 = vpop.trf.xlu0 }
 0x3e4   :  { %1222 = vmatmul.mubr.msk.f32.gmra.mrb[14].mxu1 %vm491_vm1, %v734_v32 }
 0x3e5   :  { %1087 = vmatprep.mubr.f32.mxu1 %v1312_v45 }
 0x40b   :  { %v660_v57 = vpop.permute.xlu0 %659 }
 0x452   :  { %v1212_v33 = vpop.f32.mrb[8].mxu1 }
 0x453   :  { %v573_v34 = vpop.f32.mrb[9].mxu1 }
 0x454   :  { %592 = vxpose.xlu1.b32.start [1/2] (short) (narrow) %v573_v34, 8 }
 0x458   :  { %593 = vxpose.xlu1.b32.end [2/2] (short) (narrow) %v1212_v33, 8 }
 0x46d   :  { %v1215_v35 = vpop.f32.mrb[10].mxu1 }
 0x46e   :  { %v583_v36 = vpop.f32.mrb[11].mxu1 }
 0x46f   :  { %624 = vxpose.xlu0.b32.start [1/2] (short) (narrow) %v583_v36, 8 }
 0x473   :  { %625 = vxpose.xlu0.b32.end [2/2] (short) (narrow) %v1215_v35, 8 }
 0x4a7   :  { %v1220_v37 = vpop.f32.mrb[12].mxu1 }
 0x4a8   :  { %v830_v38 = vpop.f32.mrb[13].mxu1 }
 0x4a9   :  { %849 = vxpose.xlu0.b32.start [1/2] (short) (narrow) %v830_v38, 8 }
 0x4ad   :  { %850 = vxpose.xlu0.b32.end [2/2] (short) (narrow) %v1220_v37, 8 }
 0x4b7   :  { %v1223_v46 = vpop.f32.mrb[14].mxu1 }
 0x4b8   :  { %v840_v47 = vpop.f32.mrb[15].mxu1 }
 0x4b9   :  { %881 = vxpose.xlu1.b32.start [1/2] (short) (narrow) %v840_v47, 8 }
 0x4bd   :  { %882 = vxpose.xlu1.b32.end [2/2] (short) (narrow) %v1223_v46, 8 }
 0x4d4   :  { %v608_v56 = vpop.trf.xlu1 }
 0x4d5   :  { %v662_v58 = vadd.f32 %v660_v57, %v608_v56 }
 0x4d7   :  { %v1129_v59 = vmul.f32 -1.442695, %v662_v58 }
 0x4d9   :  { %1270 = vpow2.f32 %v1129_v59 }
 0x4e3   :  { %v1271_v63 = vpop.eup %1270 }
 0x4e4   :  { %v670_v0 = vadd.f32 1.0, %v1271_v63 }
 0x4ef   :  { %v640_v60 = vpop.trf.xlu0 }
 0x4f0   :  { %v663_v61 = vadd.f32 %v660_v57, %v640_v60 }
 0x4f2   :  { %v1130_v62 = vmul.f32 -1.442695, %v663_v61 }
 0x4f4   :  { %1272 = vpow2.f32 %v1130_v62 }
 0x4f5   :  { %1274 = vrcp.f32 %v670_v0 }
 0x4fe   :  { %v1273_v1 = vpop.eup %1272 }
 0x4ff   :  { %v671_v2 = vadd.f32 1.0, %v1273_v1  ;;  %v1275_v3 = vpop.eup %1274 }
 0x501   :  { %1276 = vrcp.f32 %v671_v2 }
 0x50b   :  { %v1277_v4 = vpop.eup %1276 }
 0x50c   :  { %v939_v5 = vcombine.low %v1275_v3, %v1277_v4 }
 0x50e   :  { %1138 = vmatmul.mubr.msk.f32.vlgmr.msra.gmra.mrb[2].mxu0 %vm940_vm2, %v939_v5 }
 0x529   :  { %v865_v6 = vpop.trf.xlu0 }
 0x52a   :  { %v919_v7 = vadd.f32 %v917_v55, %v865_v6 }
 0x52c   :  { %v1136_v8 = vmul.f32 -1.442695, %v919_v7 }
 0x52e   :  { %1278 = vpow2.f32 %v1136_v8 }
 0x538   :  { %v1279_v12 = vpop.eup %1278 }
 0x539   :  { %v897_v9 = vpop.trf.xlu1  ;;  %v927_v13 = vadd.f32 1.0, %v1279_v12 }
 0x53a   :  { %v920_v10 = vadd.f32 %v917_v55, %v897_v9 }
 0x53c   :  { %v1137_v11 = vmul.f32 -1.442695, %v920_v10 }
 0x53e   :  { %1280 = vpow2.f32 %v1137_v11 }
 0x53f   :  { %1282 = vrcp.f32 %v927_v13 }
 0x548   :  { %v1281_v14 = vpop.eup %1280 }
 0x549   :  { %v928_v15 = vadd.f32 1.0, %v1281_v14  ;;  %v1283_v16 = vpop.eup %1282 }
 0x54b   :  { %1284 = vrcp.f32 %v928_v15 }
 0x555   :  { %v1285_v17 = vpop.eup %1284 }
 0x556   :  { %v1020_v18 = vcombine.low %v1283_v16, %v1285_v17 }
 0x558   :  { %1139 = vmatmul.mubr.msk.f32.vlgmr.msra.gmra.mrb[16].mxu1 %vm940_vm2, %v1020_v18 }
 0x5e1   :  { %v1009_v19 = vpop.f32.mrb[2].mxu0 }
 0x5e2   :  { %v1011_v20 = vpop.f32.mrb[3].mxu0 }
 0x62b   :  { %v1089_v21 = vpop.f32.mrb[16].mxu1 }
 0x62c   :  { %v1094_v22 = vmul.f32 %v1089_v21, %v1009_v19  ;;  %v1091_v23 = vpop.f32.mrb[17].mxu1 }
 0x62d   :  { %v1095_v24 = vmul.f32 %v1091_v23, %v1011_v20 }
 0x62e   :  { %v1096_v26 = vmul.f32 %v1094_v22, %v1479_v49 }
 0x62f   :  { %v1097_v27 = vmul.f32 %v1095_v24, %v1431_v25 }
 0x630   :  { %1098 = vst [vmem:[#allocation2] sm:$0xff] %v1096_v26 }
 0x631   :  { %1099 = vst [vmem:[#allocation2 + $0x8] sm:$0xff] %v1097_v27 }
 0x632   :  { %1297 = shalt.err (!%p1294_p4)
}
 0x633   :  { %s1298_s2 = scalar_lea.hbm %s1578_s11, 256 }
 0x634   :  { %p1299_p5 = scmp.ne.s32.totalorder %s1578_s11, %s1298_s2  ;;  %p1302_p6 = scmp.lt.u32.totalorder %s1298_s2, %s1578_s11 }
 0x636   :  { %p1304_p7 = pnand %p1302_p6, %p1299_p5 }
 0x638   :  { %1307 = shalt.err (!%p1304_p7)
}
 0x639   :  { %1109 = dma.vmem_to_hbm [thread:$0]  %s1107_s1, 256, %s1578_s11, [#allocation3]  }
 0x63a   :  { %1308 = dma.done.wait [#allocation3], 256  }
 0x63b   :  { %1309 = vsyncadd [#allocation3], 4294967040 }
 0x63c   :  { %1113 = vsyncpa [#allocation3], 1 }

</bundles_post_ra>
